<compile_context>
chip_gen: v7x
topology: tpu7x:2x2x1
jax: 0.10.0
libtpu: 0.0.40
codegen_flags: <defaults>
</compile_context>

<pallas_src>
import functools

import numpy as np
import jax
import jax.numpy as jnp
from jax.experimental import pallas as pl
from jax.experimental.pallas import tpu as pltpu


def _round_up(x, m):
    return ((x + m - 1) // m) * m


def _pick_tiles(n, align, tmax):
    """Pad n up to `align`; tile with `tmax` if the padded size exceeds it."""
    n_pad = _round_up(max(int(n), 1), align)
    if n_pad <= tmax:
        return n_pad, n_pad
    return _round_up(n_pad, tmax), tmax


def _tpauc_kl_kernel(cnt_ref, scal_ref, fn_ref, fp_ref, u_ref,
                     loss_ref, u_new_ref, w_new_ref,
                     s1_ref, s2_ref, a_ref, b_ref,
                     *, margin, inv_lam, r, g0, one_minus_g0,
                     g1, one_minus_g1, tp, tq):
    p_id = pl.program_id(0)            # lane-tile (positives) index
    q_id = pl.program_id(1)            # sublane-tile (negatives, reduction) index
    num_p = pl.num_programs(0)
    num_q = pl.num_programs(1)

    p_n = cnt_ref[0]                   # true number of positives  (int32)
    q_n = cnt_ref[1]                   # true number of negatives  (int32)
    w_prev = scal_ref[0]
    inv_p = scal_ref[1]                # 1 / true P
    inv_q = scal_ref[2]                # 1 / true Q

    @pl.when(jnp.logical_and(p_id == 0, q_id == 0))
    def _():
        a_ref[...] = jnp.zeros_like(a_ref)
        b_ref[...] = jnp.zeros_like(b_ref)

    @pl.when(q_id == 0)
    def _():
        s1_ref[...] = jnp.zeros_like(s1_ref)
        s2_ref[...] = jnp.zeros_like(s2_ref)

    # (tq, tp) pairwise tile: diff[j, i] = f_p[i] - f_n[j]
    diff = fp_ref[...] - fn_ref[...]                     # (1,Tp)-(Tq,1) -> (Tq,Tp)
    hinge = jnp.maximum(margin - diff, 0.0)
    loss_t = hinge * hinge                               # squared-hinge surrogate
    # exp is detached in torch; forward value identical.  NOTE: like the torch
    # original, exp(loss/Lambda) can overflow f32 for very large score gaps.
    exp_t = jnp.exp(loss_t * inv_lam)

    # mask padded negatives (sublanes) and padded positives (lanes)
    neg_idx = q_id * tq + jax.lax.broadcasted_iota(jnp.int32, (tq, tp), 0)
    pos_idx = p_id * tp + jax.lax.broadcasted_iota(jnp.int32, (tq, tp), 1)
    valid = jnp.logical_and(neg_idx < q_n, pos_idx < p_n)
    exp_m = jnp.where(valid, exp_t, 0.0)

    s1_ref[...] += jnp.sum(exp_m, axis=0, keepdims=True)             # (1, Tp)
    s2_ref[...] += jnp.sum(exp_m * loss_t, axis=0, keepdims=True)    # (1, Tp)

    @pl.when(q_id == num_q - 1)
    def _():
        lane_idx = p_id * tp + jax.lax.broadcasted_iota(jnp.int32, (1, tp), 1)
        pos_valid = lane_idx < p_n
        pos_mask = pos_valid.astype(jnp.float32)

        # u_new = (1-g0)*u + g0*mean_j exp(loss/Lambda)   (lane-dense (1, Tp))
        u_new = one_minus_g0 * u_ref[...] + (g0 * inv_q) * s1_ref[...]
        u_new_ref[...] = u_new

        u_safe = jnp.where(pos_valid, u_new, 1.0)
        u_pow_m1 = u_safe ** (r - 1.0)                    # u^(Lambda/tau - 1)
        a_ref[...] += jnp.sum(u_pow_m1 * u_safe * pos_mask, axis=1, keepdims=True)
        b_ref[...] += jnp.sum(u_pow_m1 * s2_ref[...] * pos_mask, axis=1,
                              keepdims=True)

    @pl.when(jnp.logical_and(q_id == num_q - 1, p_id == num_p - 1))
    def _():
        # w_new = (1-g1)*w + g1 * mean_i u_new_i^r
        w_new = one_minus_g1 * w_prev + (g1 * inv_p) * a_ref[...]
        w_new_ref[...] = w_new
        # loss = sum_ij u_i^(r-1) * exp_ij * loss_ij / (P * Q * w_new)
        loss_ref[...] = b_ref[...] * (inv_p * inv_q) / w_new


def tpauc_kl_forward(f_ps, f_ns, u_prev, w_prev, *, margin, Lambda, tau,
                     gamma0, gamma1, tp_max=512, tq_max=512):
    """Pallas hot path.
    f_ps: (P,) positive scores, f_ns: (Q,) negative scores,
    u_prev: (P,) current u_pos[index_p], w_prev: scalar state.
    Returns (loss scalar, updated u (P,), updated w scalar)."""
    Pn = int(f_ps.shape[0])
    Qn = int(f_ns.shape[0])

    # positives on lanes (mult of 128), negatives on sublanes (mult of 8)
    P_pad, Tp = _pick_tiles(Pn, 128, tp_max)
    Q_pad, Tq = _pick_tiles(Qn, 8, tq_max)

    fp = jnp.zeros((1, P_pad), jnp.float32).at[0, :Pn].set(
        jnp.asarray(f_ps, jnp.float32).reshape(-1))
    fn = jnp.zeros((Q_pad, 1), jnp.float32).at[:Qn, 0].set(
        jnp.asarray(f_ns, jnp.float32).reshape(-1))
    u = jnp.zeros((1, P_pad), jnp.float32).at[0, :Pn].set(
        jnp.asarray(u_prev, jnp.float32).reshape(-1))

    counts = jnp.array([Pn, Qn], jnp.int32)
    scalars = jnp.stack([jnp.asarray(w_prev, jnp.float32),
                         jnp.float32(1.0 / Pn),
                         jnp.float32(1.0 / Qn)])

    kernel = functools.partial(
        _tpauc_kl_kernel,
        margin=float(margin),
        inv_lam=1.0 / float(Lambda),
        r=float(Lambda) / float(tau),
        g0=float(gamma0), one_minus_g0=1.0 - float(gamma0),
        g1=float(gamma1), one_minus_g1=1.0 - float(gamma1),
        tp=Tp, tq=Tq)

    grid = (P_pad // Tp, Q_pad // Tq)

    loss, u_new, w_new = pl.pallas_call(
        kernel,
        grid=grid,
        in_specs=[
            pl.BlockSpec(memory_space=pltpu.MemorySpace.SMEM),    # counts
            pl.BlockSpec(memory_space=pltpu.MemorySpace.SMEM),    # w_prev, 1/P, 1/Q
            pl.BlockSpec((Tq, 1), lambda p, q: (q, 0)),           # negatives
            pl.BlockSpec((1, Tp), lambda p, q: (0, p)),           # positives
            pl.BlockSpec((1, Tp), lambda p, q: (0, p)),           # u_prev
        ],
        out_specs=(
            pl.BlockSpec((1, 1), lambda p, q: (0, 0)),            # loss
            pl.BlockSpec((1, Tp), lambda p, q: (0, p)),           # u_new (lane-dense)
            pl.BlockSpec((1, 1), lambda p, q: (0, 0)),            # w_new
        ),
        out_shape=(
            jax.ShapeDtypeStruct((1, 1), jnp.float32),
            jax.ShapeDtypeStruct((1, P_pad), jnp.float32),
            jax.ShapeDtypeStruct((1, 1), jnp.float32),
        ),
        scratch_shapes=[
            pltpu.VMEM((1, Tp), jnp.float32),   # S1 accumulator
            pltpu.VMEM((1, Tp), jnp.float32),   # S2 accumulator
            pltpu.VMEM((1, 1), jnp.float32),    # A = sum_i u_new^r
            pltpu.VMEM((1, 1), jnp.float32),    # B = sum_i u_new^(r-1) * S2
        ],
        compiler_params=pltpu.CompilerParams(
            dimension_semantics=("arbitrary", "arbitrary")),
    )(counts, scalars, fn, fp, u)

    return loss[0, 0], u_new[0, :Pn], w_new[0, 0]


class TpAUCKLLoss:
    """JAX/Pallas port of libauc.losses.auc.tpAUC_KL_Loss (forward only)."""

    def __init__(self, pos_len, tau=1.0, Lambda=1.0, margin=1.0,
                 tp_max=512, tq_max=512):
        self.gamma0 = 0.9
        self.gamma1 = 0.9
        self.Lambda = Lambda
        self.tau = tau
        self.margin = margin
        self.tp_max = tp_max
        self.tq_max = tq_max
        self.u_pos = jnp.zeros((pos_len,), jnp.float32)   # state buffer
        self.w = jnp.float32(0.0)                          # scalar state

    def set_coef(self, gamma0, gamma1):
        self.gamma0 = gamma0
        self.gamma1 = gamma1

    def forward(self, y_pred, y_true, index_p):
        # glue: boolean masking produces dynamic shapes, so do the partition on
        # concrete host arrays; the padded/masked P x Q hot path runs in Pallas.
        y_pred = np.asarray(y_pred, np.float32).reshape(-1)
        y_true = np.asarray(y_true).reshape(-1)
        index_p = np.asarray(index_p).reshape(-1)
        f_ps = y_pred[y_true == 1]
        f_ns = y_pred[y_true == 0]
        idx = index_p[index_p >= 0].astype(np.int32)

        if f_ps.size == 0 or f_ns.size == 0:
            # torch would produce NaN here; skip the update instead.
            return jnp.float32(0.0)

        idx_j = jnp.asarray(idx)
        u_prev = self.u_pos[idx_j]
        loss, u_new, w_new = tpauc_kl_forward(
            jnp.asarray(f_ps), jnp.asarray(f_ns), u_prev, self.w,
            margin=self.margin, Lambda=self.Lambda, tau=self.tau,
            gamma0=self.gamma0, gamma1=self.gamma1,
            tp_max=self.tp_max, tq_max=self.tq_max)

        # TODO(synk): fuse this u_pos gather/scatter into the kernel via
        # PrefetchScalarGridSpec (pl.Element index_map) + input_output_aliases
        # to drop the extra XLA dispatches / HBM round trip.
        self.u_pos = self.u_pos.at[idx_j].set(u_new)
        self.w = w_new
        return loss


def _reference_forward(y_pred, y_true, index_p, u_pos, w,
                       margin, Lambda, tau, gamma0, gamma1):
    """Pure numpy transcription of the torch forward for verification."""
    y_pred = np.asarray(y_pred, np.float64).reshape(-1, 1)
    y_true = np.asarray(y_true).reshape(-1)
    f_ps = y_pred[y_true == 1].reshape(-1, 1)
    f_ns = y_pred[y_true == 0].reshape(-1, 1)
    idx = index_p[index_p >= 0]
    diff = f_ps - f_ns.T
    loss = np.maximum(margin - diff, 0.0) ** 2
    exp_loss = np.exp(loss / Lambda)
    u = np.asarray(u_pos, np.float64).copy()
    u[idx] = (1 - gamma0) * u[idx] + gamma0 * exp_loss.mean(1)
    w = (1 - gamma1) * w + gamma1 * np.mean(u[idx] ** (Lambda / tau))
    p = (u[idx].reshape(-1, 1) ** (Lambda / tau - 1.0)) * exp_loss / w
    return np.mean(p * loss), u, w


if __name__ == "__main__":
    # ---- test 1: small batch, single tile ---------------------------------
    P, Q = 8, 16            # positives / negatives in the mini-batch
    POS_LEN = 32            # total number of positives in the dataset
    N = P + Q

    key = jax.random.PRNGKey(0)
    y_pred = 0.5 * jax.random.normal(key, (N, 1), dtype=jnp.float32)
    y_true = np.concatenate([np.ones(P, np.int32), np.zeros(Q, np.int32)])
    index_p = np.concatenate([3 * np.arange(P, dtype=np.int32),
                              -np.ones(Q, np.int32)])

    crit = TpAUCKLLoss(pos_len=POS_LEN, tau=0.5, Lambda=1.0, margin=1.0)
    loss = jax.block_until_ready(crit.forward(y_pred, y_true, index_p))

    ref_loss, ref_u, ref_w = _reference_forward(
        np.asarray(y_pred), y_true, index_p,
        np.zeros(POS_LEN, np.float32), 0.0,
        margin=1.0, Lambda=1.0, tau=0.5, gamma0=0.9, gamma1=0.9)
    np.testing.assert_allclose(float(loss), ref_loss, rtol=1e-4, atol=1e-5)
    np.testing.assert_allclose(np.asarray(crit.u_pos), ref_u, rtol=1e-4, atol=1e-6)
    np.testing.assert_allclose(float(crit.w), ref_w, rtol=1e-4, atol=1e-6)

    # ---- test 2: multi-tile grid (2 lane tiles x 7 sublane tiles), padding /
    #              masking exercised, two sequential steps (nonzero w_prev) ---
    P2, Q2 = 200, 100
    POS_LEN2 = 256
    N2 = P2 + Q2
    y_pred2a = 0.5 * jax.random.normal(jax.random.PRNGKey(1), (N2, 1), jnp.float32)
    y_pred2b = 0.5 * jax.random.normal(jax.random.PRNGKey(2), (N2, 1), jnp.float32)
    y_true2 = np.concatenate([np.ones(P2, np.int32), np.zeros(Q2, np.int32)])
    index_p2 = np.concatenate([np.arange(P2, dtype=np.int32),
                               -np.ones(Q2, np.int32)])

    crit2 = TpAUCKLLoss(pos_len=POS_LEN2, tau=2.0, Lambda=1.5, margin=0.8,
                        tp_max=128, tq_max=16)
    l2a = crit2.forward(y_pred2a, y_true2, index_p2)
    l2b = jax.block_until_ready(crit2.forward(y_pred2b, y_true2, index_p2))

    u_ref = np.zeros(POS_LEN2, np.float64)
    w_ref = 0.0
    ra, u_ref, w_ref = _reference_forward(
        np.asarray(y_pred2a), y_true2, index_p2, u_ref, w_ref,
        margin=0.8, Lambda=1.5, tau=2.0, gamma0=0.9, gamma1=0.9)
    rb, u_ref, w_ref = _reference_forward(
        np.asarray(y_pred2b), y_true2, index_p2, u_ref, w_ref,
        margin=0.8, Lambda=1.5, tau=2.0, gamma0=0.9, gamma1=0.9)
    np.testing.assert_allclose(float(l2a), ra, rtol=1e-4, atol=1e-5)
    np.testing.assert_allclose(float(l2b), rb, rtol=1e-4, atol=1e-5)
    np.testing.assert_allclose(np.asarray(crit2.u_pos), u_ref, rtol=1e-4, atol=1e-5)
    np.testing.assert_allclose(float(crit2.w), w_ref, rtol=1e-4, atol=1e-5)

    print("KERNEL_OK")
</pallas_src>

<mosaic_0001>
module attributes {stable_mosaic.version = 11 : i64} {
  func.func @_tpauc_kl_kernel(%arg0: i32, %arg1: i32, %arg2: memref<2xi32, #tpu.memory_space<smem>>, %arg3: memref<3xf32, #tpu.memory_space<smem>>, %arg4: memref<16x1xf32, #tpu.memory_space<vmem>>, %arg5: memref<1x128xf32, #tpu.memory_space<vmem>>, %arg6: memref<1x128xf32, #tpu.memory_space<vmem>>, %arg7: memref<1x1xf32, #tpu.memory_space<vmem>>, %arg8: memref<1x128xf32, #tpu.memory_space<vmem>>, %arg9: memref<1x1xf32, #tpu.memory_space<vmem>>, %arg10: memref<1x128xf32, #tpu.memory_space<vmem>>, %arg11: memref<1x128xf32, #tpu.memory_space<vmem>>, %arg12: memref<1x1xf32, #tpu.memory_space<vmem>>, %arg13: memref<1x1xf32, #tpu.memory_space<vmem>>) attributes {dimension_semantics = [#tpu.dimension_semantics<arbitrary>, #tpu.dimension_semantics<arbitrary>], iteration_bounds = array<i64: 1, 1>, scalar_prefetch = 0 : i64, scratch_operands = 4 : i64, tpu.core_type = #tpu.core_type<tc>, window_params = [{transform_indices = @transform_0, window_bounds = array<i64: 2>}, {transform_indices = @transform_1, window_bounds = array<i64: 3>}, {transform_indices = @transform_2, window_bounds = array<i64: 16, 1>}, {transform_indices = @transform_3, window_bounds = array<i64: 1, 128>}, {transform_indices = @transform_4, window_bounds = array<i64: 1, 128>}, {pipeline_mode = #tpu.pipeline_mode<synchronous>, transform_indices = @transform_5, window_bounds = array<i64: 1, 1>}, {transform_indices = @transform_6, window_bounds = array<i64: 1, 128>}, {pipeline_mode = #tpu.pipeline_mode<synchronous>, transform_indices = @transform_7, window_bounds = array<i64: 1, 1>}]} {
    %c0 = arith.constant 0 : index
    %0 = memref.load %arg2[%c0] : memref<2xi32, #tpu.memory_space<smem>>
    %c1 = arith.constant 1 : index
    %1 = memref.load %arg2[%c1] : memref<2xi32, #tpu.memory_space<smem>>
    %c0_0 = arith.constant 0 : index
    %2 = memref.load %arg3[%c0_0] : memref<3xf32, #tpu.memory_space<smem>>
    %c1_1 = arith.constant 1 : index
    %3 = memref.load %arg3[%c1_1] : memref<3xf32, #tpu.memory_space<smem>>
    %c2 = arith.constant 2 : index
    %4 = memref.load %arg3[%c2] : memref<3xf32, #tpu.memory_space<smem>>
    %c0_i32 = arith.constant 0 : i32
    %5 = arith.cmpi eq, %arg0, %c0_i32 : i32
    %c0_i32_2 = arith.constant 0 : i32
    %6 = arith.cmpi eq, %arg1, %c0_i32_2 : i32
    %7 = arith.andi %5, %6 : i1
    %8 = arith.extui %7 : i1 to i32
    %c0_i32_3 = arith.constant 0 : i32
    %9 = arith.cmpi ne, %8, %c0_i32_3 : i32
    scf.if %9 {
      %cst_28 = arith.constant 0.000000e+00 : f32
      %60 = vector.broadcast %cst_28 : f32 to vector<1x1xf32>
      %c0_29 = arith.constant 0 : index
      %c0_30 = arith.constant 0 : index
      %61 = vector.load %arg12[%c0_29, %c0_30] : memref<1x1xf32, #tpu.memory_space<vmem>>, vector<1x1xf32>
      tpu.vector_store %arg12[%c0_29, %c0_30], %60 {strides = array<i32>} : memref<1x1xf32, #tpu.memory_space<vmem>>, vector<1x1xf32>,
      %cst_31 = arith.constant 0.000000e+00 : f32
      %62 = vector.broadcast %cst_31 : f32 to vector<1x1xf32>
      %c0_32 = arith.constant 0 : index
      %c0_33 = arith.constant 0 : index
      %63 = vector.load %arg13[%c0_32, %c0_33] : memref<1x1xf32, #tpu.memory_space<vmem>>, vector<1x1xf32>
      tpu.vector_store %arg13[%c0_32, %c0_33], %62 {strides = array<i32>} : memref<1x1xf32, #tpu.memory_space<vmem>>, vector<1x1xf32>,
    } else {
    }
    %c0_i32_4 = arith.constant 0 : i32
    %10 = arith.cmpi eq, %arg1, %c0_i32_4 : i32
    %11 = arith.extui %10 : i1 to i32
    %c0_i32_5 = arith.constant 0 : i32
    %12 = arith.cmpi ne, %11, %c0_i32_5 : i32
    scf.if %12 {
      %cst_28 = arith.constant 0.000000e+00 : f32
      %60 = vector.broadcast %cst_28 : f32 to vector<1x128xf32>
      %c0_29 = arith.constant 0 : index
      %c0_30 = arith.constant 0 : index
      %61 = vector.load %arg10[%c0_29, %c0_30] : memref<1x128xf32, #tpu.memory_space<vmem>>, vector<1x128xf32>
      tpu.vector_store %arg10[%c0_29, %c0_30], %60 {strides = array<i32>} : memref<1x128xf32, #tpu.memory_space<vmem>>, vector<1x128xf32>,
      %cst_31 = arith.constant 0.000000e+00 : f32
      %62 = vector.broadcast %cst_31 : f32 to vector<1x128xf32>
      %c0_32 = arith.constant 0 : index
      %c0_33 = arith.constant 0 : index
      %63 = vector.load %arg11[%c0_32, %c0_33] : memref<1x128xf32, #tpu.memory_space<vmem>>, vector<1x128xf32>
      tpu.vector_store %arg11[%c0_32, %c0_33], %62 {strides = array<i32>} : memref<1x128xf32, #tpu.memory_space<vmem>>, vector<1x128xf32>,
    } else {
    }
    %c0_6 = arith.constant 0 : index
    %c0_7 = arith.constant 0 : index
    %13 = vector.load %arg5[%c0_6, %c0_7] : memref<1x128xf32, #tpu.memory_space<vmem>>, vector<1x128xf32>
    %c0_8 = arith.constant 0 : index
    %c0_9 = arith.constant 0 : index
    %14 = vector.load %arg4[%c0_8, %c0_9] : memref<16x1xf32, #tpu.memory_space<vmem>>, vector<16x1xf32>
    %15 = vector.broadcast %13 : vector<1x128xf32> to vector<16x128xf32>
    %16 = vector.broadcast %14 : vector<16x1xf32> to vector<16x128xf32>
    %17 = arith.subf %15, %16 : vector<16x128xf32>
    %cst = arith.constant 1.000000e+00 : f32
    %18 = vector.broadcast %cst : f32 to vector<16x128xf32>
    %19 = arith.subf %18, %17 : vector<16x128xf32>
    %cst_10 = arith.constant 0.000000e+00 : f32
    %20 = vector.broadcast %cst_10 : f32 to vector<16x128xf32>
    %21 = arith.maximumf %19, %20 : vector<16x128xf32>
    %22 = arith.mulf %21, %21 : vector<16x128xf32>
    %cst_11 = arith.constant 1.000000e+00 : f32
    %23 = vector.broadcast %cst_11 : f32 to vector<16x128xf32>
    %24 = arith.mulf %22, %23 : vector<16x128xf32>
    %25 = math.exp %24 : vector<16x128xf32>
    %c16_i32 = arith.constant 16 : i32
    %26 = arith.muli %arg1, %c16_i32 : i32
    %27 = tpu.iota {dimensions = array<i32: 0>} : vector<16x128xi32>
    %28 = vector.broadcast %26 : i32 to vector<16x128xi32>
    %29 = arith.addi %28, %27 : vector<16x128xi32>
    %c128_i32 = arith.constant 128 : i32
    %30 = arith.muli %arg0, %c128_i32 : i32
    %31 = tpu.iota {dimensions = array<i32: 1>} : vector<16x128xi32>
    %32 = vector.broadcast %30 : i32 to vector<16x128xi32>
    %33 = arith.addi %32, %31 : vector<16x128xi32>
    %34 = vector.broadcast %1 : i32 to vector<16x128xi32>
    %35 = arith.cmpi slt, %29, %34 : vector<16x128xi32>
    %36 = vector.broadcast %0 : i32 to vector<16x128xi32>
    %37 = arith.cmpi slt, %33, %36 : vector<16x128xi32>
    %38 = arith.andi %35, %37 : vector<16x128xi1>
    %cst_12 = arith.constant 0.000000e+00 : f32
    %39 = vector.broadcast %cst_12 : f32 to vector<16x128xf32>
    %40 = arith.select %38, %25, %39 : vector<16x128xi1>, vector<16x128xf32>
    %c0_13 = arith.constant 0 : index
    %c0_14 = arith.constant 0 : index
    %41 = vector.load %arg10[%c0_13, %c0_14] : memref<1x128xf32, #tpu.memory_space<vmem>>, vector<1x128xf32>
    %cst_15 = arith.constant dense<0.000000e+00> : vector<128xf32>
    %42 = vector.multi_reduction <add>, %40, %cst_15 [0] : vector<16x128xf32> to vector<128xf32>
    %43 = vector.shape_cast %42 : vector<128xf32> to vector<1x128xf32>
    %44 = arith.addf %41, %43 : vector<1x128xf32>
    %c0_16 = arith.constant 0 : index
    %c0_17 = arith.constant 0 : index
    %45 = vector.load %arg10[%c0_16, %c0_17] : memref<1x128xf32, #tpu.memory_space<vmem>>, vector<1x128xf32>
    tpu.vector_store %arg10[%c0_16, %c0_17], %44 {strides = array<i32>} : memref<1x128xf32, #tpu.memory_space<vmem>>, vector<1x128xf32>,
    %c0_18 = arith.constant 0 : index
    %c0_19 = arith.constant 0 : index
    %46 = vector.load %arg11[%c0_18, %c0_19] : memref<1x128xf32, #tpu.memory_space<vmem>>, vector<1x128xf32>
    %47 = arith.mulf %40, %22 : vector<16x128xf32>
    %cst_20 = arith.constant dense<0.000000e+00> : vector<128xf32>
    %48 = vector.multi_reduction <add>, %47, %cst_20 [0] : vector<16x128xf32> to vector<128xf32>
    %49 = vector.shape_cast %48 : vector<128xf32> to vector<1x128xf32>
    %50 = arith.addf %46, %49 : vector<1x128xf32>
    %c0_21 = arith.constant 0 : index
    %c0_22 = arith.constant 0 : index
    %51 = vector.load %arg11[%c0_21, %c0_22] : memref<1x128xf32, #tpu.memory_space<vmem>>, vector<1x128xf32>
    tpu.vector_store %arg11[%c0_21, %c0_22], %50 {strides = array<i32>} : memref<1x128xf32, #tpu.memory_space<vmem>>, vector<1x128xf32>,
    %c0_i32_23 = arith.constant 0 : i32
    %52 = arith.cmpi eq, %arg1, %c0_i32_23 : i32
    %53 = arith.extui %52 : i1 to i32
    %c0_i32_24 = arith.constant 0 : i32
    %54 = arith.cmpi ne, %53, %c0_i32_24 : i32
    scf.if %54 {
      %c128_i32_28 = arith.constant 128 : i32
      %60 = arith.muli %arg0, %c128_i32_28 : i32
      %61 = tpu.iota {dimensions = array<i32: 1>} : vector<1x128xi32>
      %62 = vector.broadcast %60 : i32 to vector<1x128xi32>
      %63 = arith.addi %62, %61 : vector<1x128xi32>
      %64 = vector.broadcast %0 : i32 to vector<1x128xi32>
      %65 = arith.cmpi slt, %63, %64 : vector<1x128xi32>
      %66 = arith.extui %65 : vector<1x128xi1> to vector<1x128xi32>
      %67 = arith.sitofp %66 : vector<1x128xi32> to vector<1x128xf32>
      %c0_29 = arith.constant 0 : index
      %c0_30 = arith.constant 0 : index
      %68 = vector.load %arg6[%c0_29, %c0_30] : memref<1x128xf32, #tpu.memory_space<vmem>>, vector<1x128xf32>
      %cst_31 = arith.constant 1.000000e-01 : f32
      %69 = vector.broadcast %cst_31 : f32 to vector<1x128xf32>
      %70 = arith.mulf %69, %68 : vector<1x128xf32>
      %cst_32 = arith.constant 0.899999976 : f32
      %71 = arith.mulf %cst_32, %4 : f32
      %c0_33 = arith.constant 0 : index
      %c0_34 = arith.constant 0 : index
      %72 = vector.load %arg10[%c0_33, %c0_34] : memref<1x128xf32, #tpu.memory_space<vmem>>, vector<1x128xf32>
      %73 = vector.broadcast %71 : f32 to vector<1x128xf32>
      %74 = arith.mulf %73, %72 : vector<1x128xf32>
      %75 = arith.addf %70, %74 : vector<1x128xf32>
      %c0_35 = arith.constant 0 : index
      %c0_36 = arith.constant 0 : index
      %76 = vector.load %arg8[%c0_35, %c0_36] : memref<1x128xf32, #tpu.memory_space<vmem>>, vector<1x128xf32>
      tpu.vector_store %arg8[%c0_35, %c0_36], %75 {strides = array<i32>} : memref<1x128xf32, #tpu.memory_space<vmem>>, vector<1x128xf32>,
      %cst_37 = arith.constant 1.000000e+00 : f32
      %77 = vector.broadcast %cst_37 : f32 to vector<1x128xf32>
      %78 = arith.select %65, %75, %77 : vector<1x128xi1>, vector<1x128xf32>
      %cst_38 = arith.constant 1.000000e+00 : f32
      %79 = vector.broadcast %cst_38 : f32 to vector<1x128xf32>
      %80 = math.powf %78, %79 : vector<1x128xf32>
      %c0_39 = arith.constant 0 : index
      %c0_40 = arith.constant 0 : index
      %81 = vector.load %arg12[%c0_39, %c0_40] : memref<1x1xf32, #tpu.memory_space<vmem>>, vector<1x1xf32>
      %82 = arith.mulf %80, %78 : vector<1x128xf32>
      %83 = arith.mulf %82, %67 : vector<1x128xf32>
      %cst_41 = arith.constant dense<0.000000e+00> : vector<1xf32>
      %84 = vector.multi_reduction <add>, %83, %cst_41 [1] : vector<1x128xf32> to vector<1xf32>
      %85 = vector.shape_cast %84 : vector<1xf32> to vector<1x1xf32>
      %86 = arith.addf %81, %85 : vector<1x1xf32>
      %c0_42 = arith.constant 0 : index
      %c0_43 = arith.constant 0 : index
      %87 = vector.load %arg12[%c0_42, %c0_43] : memref<1x1xf32, #tpu.memory_space<vmem>>, vector<1x1xf32>
      tpu.vector_store %arg12[%c0_42, %c0_43], %86 {strides = array<i32>} : memref<1x1xf32, #tpu.memory_space<vmem>>, vector<1x1xf32>,
      %c0_44 = arith.constant 0 : index
      %c0_45 = arith.constant 0 : index
      %88 = vector.load %arg13[%c0_44, %c0_45] : memref<1x1xf32, #tpu.memory_space<vmem>>, vector<1x1xf32>
      %c0_46 = arith.constant 0 : index
      %c0_47 = arith.constant 0 : index
      %89 = vector.load %arg11[%c0_46, %c0_47] : memref<1x128xf32, #tpu.memory_space<vmem>>, vector<1x128xf32>
      %90 = arith.mulf %80, %89 : vector<1x128xf32>
      %91 = arith.mulf %90, %67 : vector<1x128xf32>
      %cst_48 = arith.constant dense<0.000000e+00> : vector<1xf32>
      %92 = vector.multi_reduction <add>, %91, %cst_48 [1] : vector<1x128xf32> to vector<1xf32>
      %93 = vector.shape_cast %92 : vector<1xf32> to vector<1x1xf32>
      %94 = arith.addf %88, %93 : vector<1x1xf32>
      %c0_49 = arith.constant 0 : index
      %c0_50 = arith.constant 0 : index
      %95 = vector.load %arg13[%c0_49, %c0_50] : memref<1x1xf32, #tpu.memory_space<vmem>>, vector<1x1xf32>
      tpu.vector_store %arg13[%c0_49, %c0_50], %94 {strides = array<i32>} : memref<1x1xf32, #tpu.memory_space<vmem>>, vector<1x1xf32>,
    } else {
    }
    %c0_i32_25 = arith.constant 0 : i32
    %55 = arith.cmpi eq, %arg1, %c0_i32_25 : i32
    %c0_i32_26 = arith.constant 0 : i32
    %56 = arith.cmpi eq, %arg0, %c0_i32_26 : i32
    %57 = arith.andi %55, %56 : i1
    %58 = arith.extui %57 : i1 to i32
    %c0_i32_27 = arith.constant 0 : i32
    %59 = arith.cmpi ne, %58, %c0_i32_27 : i32
    scf.if %59 {
      %cst_28 = arith.constant 1.000000e-01 : f32
      %60 = arith.mulf %cst_28, %2 : f32
      %cst_29 = arith.constant 0.899999976 : f32
      %61 = arith.mulf %cst_29, %3 : f32
      %c0_30 = arith.constant 0 : index
      %c0_31 = arith.constant 0 : index
      %62 = vector.load %arg12[%c0_30, %c0_31] : memref<1x1xf32, #tpu.memory_space<vmem>>, vector<1x1xf32>
      %63 = vector.broadcast %61 : f32 to vector<1x1xf32>
      %64 = arith.mulf %63, %62 : vector<1x1xf32>
      %65 = vector.broadcast %60 : f32 to vector<1x1xf32>
      %66 = arith.addf %65, %64 : vector<1x1xf32>
      %c0_32 = arith.constant 0 : index
      %c0_33 = arith.constant 0 : index
      %67 = vector.load %arg9[%c0_32, %c0_33] : memref<1x1xf32, #tpu.memory_space<vmem>>, vector<1x1xf32>
      tpu.vector_store %arg9[%c0_32, %c0_33], %66 {strides = array<i32>} : memref<1x1xf32, #tpu.memory_space<vmem>>, vector<1x1xf32>,
      %c0_34 = arith.constant 0 : index
      %c0_35 = arith.constant 0 : index
      %68 = vector.load %arg13[%c0_34, %c0_35] : memref<1x1xf32, #tpu.memory_space<vmem>>, vector<1x1xf32>
      %69 = arith.mulf %3, %4 : f32
      %70 = vector.broadcast %69 : f32 to vector<1x1xf32>
      %71 = arith.mulf %68, %70 : vector<1x1xf32>
      %72 = arith.divf %71, %66 : vector<1x1xf32>
      %c0_36 = arith.constant 0 : index
      %c0_37 = arith.constant 0 : index
      %73 = vector.load %arg7[%c0_36, %c0_37] : memref<1x1xf32, #tpu.memory_space<vmem>>, vector<1x1xf32>
      tpu.vector_store %arg7[%c0_36, %c0_37], %72 {strides = array<i32>} : memref<1x1xf32, #tpu.memory_space<vmem>>, vector<1x1xf32>,
    } else {
    }
    return
  }
  func.func @transform_0(%arg0: i32, %arg1: i32) -> i32 {
    %c0_i32 = arith.constant 0 : i32
    %c0_i32_0 = arith.constant 0 : i32
    return %c0_i32 : i32
  }
  func.func @transform_1(%arg0: i32, %arg1: i32) -> i32 {
    %c0_i32 = arith.constant 0 : i32
    %c0_i32_0 = arith.constant 0 : i32
    return %c0_i32 : i32
  }
  func.func @transform_2(%arg0: i32, %arg1: i32) -> (i32, i32) {
    %c0_i32 = arith.constant 0 : i32
    %c0_i32_0 = arith.constant 0 : i32
    return %arg1, %c0_i32 : i32, i32
  }
  func.func @transform_3(%arg0: i32, %arg1: i32) -> (i32, i32) {
    %c0_i32 = arith.constant 0 : i32
    %c0_i32_0 = arith.constant 0 : i32
    return %c0_i32, %arg0 : i32, i32
  }
  func.func @transform_4(%arg0: i32, %arg1: i32) -> (i32, i32) {
    %c0_i32 = arith.constant 0 : i32
    %c0_i32_0 = arith.constant 0 : i32
    return %c0_i32, %arg0 : i32, i32
  }
  func.func @transform_5(%arg0: i32, %arg1: i32) -> (i32, i32) {
    %c0_i32 = arith.constant 0 : i32
    %c0_i32_0 = arith.constant 0 : i32
    %c0_i32_1 = arith.constant 0 : i32
    return %c0_i32, %c0_i32_0 : i32, i32
  }
  func.func @transform_6(%arg0: i32, %arg1: i32) -> (i32, i32) {
    %c0_i32 = arith.constant 0 : i32
    %c0_i32_0 = arith.constant 0 : i32
    return %c0_i32, %arg0 : i32, i32
  }
  func.func @transform_7(%arg0: i32, %arg1: i32) -> (i32, i32) {
    %c0_i32 = arith.constant 0 : i32
    %c0_i32_0 = arith.constant 0 : i32
    %c0_i32_1 = arith.constant 0 : i32
    return %c0_i32, %c0_i32_0 : i32, i32
  }
}

</mosaic_0001>

<bundles_post_ra>
// kernel: tpu_custom_call.1
= control target key start
LH: loop header
LB: loop body
LE: loop exit
PB: predicated region body
PF: predicated region fallthrough
CT: control target
= control target key end

     0   :  { %13 = vsyncpa [#allocation8], 0  ;;  %s487_s0 = inlined_call_operand.vmem [shape: s32[2], index: 0, kind: input, shape index: {}]   ;;  %s488_s1 = inlined_call_operand.vmem [shape: f32[3], index: 1, kind: input, shape index: {}]   ;;  %s489_s2 = inlined_call_operand.vmem [shape: f32[16,1], index: 2, kind: input, shape index: {}]   ;;  %s490_s3 = inlined_call_operand.vmem [shape: f32[1,128], index: 3, kind: input, shape index: {}]   ;;  %s491_s4 = inlined_call_operand.vmem [shape: f32[1,128], index: 4, kind: input, shape index: {}]   ;;  %s492_s5 = inlined_call_operand.hbm [shape: f32[1,1], index: 5, kind: output, shape index: {0}]   ;;  %s493_s6 = inlined_call_operand.hbm [shape: f32[1,128], index: 6, kind: output, shape index: {1}]   ;;  %s494_s7 = inlined_call_operand.hbm [shape: f32[1,1], index: 7, kind: output, shape index: {2}]  }
   0x1   :  { %14 = vsyncpa [#allocation10], 0 }
   0x2   :  { %15 = vsyncpa [#allocation7], 0 }
   0x3   :  { %16 = vsyncpa [#allocation13], 0  ;;  %s23_s26 = sshll.u32 %s487_s0, 4  ;;  %s33_s29 = sshll.u32 %s488_s1, 4  ;;  %s24_s26 = int_to_ptr.vmem [resolvable:$true] %s23_s26  ;;  %s34_s29 = int_to_ptr.vmem [resolvable:$true] %s33_s29 }
   0x4   :  { %s257_s30 = scalar_lea.vmem %s24_s26, 16  ;;  %p262_p1 = scmp.lt.s32.totalorder %s24_s26, %s24_s26 }
   0x5   :  { %p258_p0 = scmp.ne.s32.totalorder %s24_s26, %s257_s30  ;;  %p263_p2 = scmp.lt.s32.totalorder %s257_s30, %s257_s30 }
   0x7   :  { %p264_p3 = por %p263_p2, %p262_p1 }
   0x9   :  { %p265_p4 = pnand %p264_p3, %p258_p0 }
   0xb   :  { %268 = shalt.err (!%p265_p4)
}
   0xc   :  { %s355_s8 = smov [#allocation6]   ;;  %s269_s9 = scalar_lea.vmem %s34_s29, 16 }
   0xd   :  { %26 = dma.vmem_to_smem %s24_s26, 16, %s355_s8, [#allocation8]  }
   0xe   :  { %p270_p5 = scmp.ne.s32.totalorder %s34_s29, %s269_s9  ;;  %p274_p6 = scmp.lt.s32.totalorder %s34_s29, %s34_s29 }
   0xf   :  { %p275_p7 = scmp.lt.s32.totalorder %s269_s9, %s269_s9 }
  0x11   :  { %p276_p8 = por %p275_p7, %p274_p6 }
  0x13   :  { %p277_p9 = pnand %p276_p8, %p270_p5 }
  0x15   :  { %280 = shalt.err (!%p277_p9)
}
  0x16   :  { %s356_s0 = smov [#allocation9]  }
  0x17   :  { %36 = dma.vmem_to_smem %s34_s29, 16, %s356_s0, [#allocation10]  }
  0x18   :  { %347 = dma.done.wait [#allocation8], 16  }
  0x19   :  { %348 = vsyncadd [#allocation8], 4294967280 }
  0x1a   :  { %349 = dma.done.wait [#allocation10], 16  }
  0x1b   :  { %350 = vsyncadd [#allocation10], 4294967280 }
  0x1c   :  { %49 = sfence }
  0x1d   :  { %v70_v0 = vld [vmem:[%s489_s2] sm:$0xff]  ;;  %v357_v1 = vmov 0   ;;  %v71_v2 = vld [vmem:[%s489_s2 + $0x8] sm:$0xff]  ;;  %v358_v3 = vmov 0.0   ;;  %vm61_vm0 = vcmask 0   ;;  %s50_s2 = sld [smem:[#allocation6]]  ;;  %v101_v15 = vlaneseq }
  0x1e   :  { %250 = vset.pattern.permute.xlu0 %v357_v1  ;;  %67 = vst [vmem:[#allocation2] sm:$0x1] %v358_v3  ;;  %68 = vst [vmem:[#allocation3] sm:$0x1] %v358_v3  ;;  %v241_v4 = vld [vmem:[%s490_s3] ss:$0 sm:$0xff] }
  0x1f   :  { %80 = vperm.xlu0 %250, %v70_v0   ;;  %62 = vst.msk [vmem:[#allocation4] sm:$0x1] %vm61_vm0, %v358_v3  ;;  %63 = vst.msk [vmem:[#allocation5] sm:$0x1] %vm61_vm0, %v358_v3  ;;  %s238_s15 = sld [smem:[#allocation6 + $0x1]]  ;;  %v102_v18 = vshrl.u32 %v101_v15, 7 }
  0x20   :  { %v109_v19 = vand.u32 127, %v101_v15  ;;  %s431_s3 = sld [smem:[#allocation9 + $0x2]]  ;;  %v148_v48 = vld [vmem:[%s491_s4] sm:$0x1]  ;;  %vm161_vm6 = vcmask 1040384   ;;  %s359_s4 = smov [#allocation12]  }
  0x21   :  { %v103_v22 = vadd.s32 8, %v102_v18  ;;  %v149_v50 = vmul.f32 0.1, %v148_v48  ;;  %s211_s19 = sshll.u32 %s359_s4, 4  ;;  %s212_s19 = int_to_ptr.vmem [resolvable:$true] %s211_s19 }
  0x22   :  { %s281_s20 = scalar_lea.vmem %s212_s19, 16  ;;  %s285_s21 = scalar_lea.vmem %s212_s19, 32 }
  0x23   :  { %85 = vperm.xlu0 %250, %v71_v2   ;;  %v115_v21 = vstv %s50_s2  ;;  %p282_p10 = scmp.ne.s32.totalorder %s212_s19, %s281_s20  ;;  %p286_p11 = scmp.lt.s32.totalorder %s212_s19, %s212_s19 }
  0x24   :  { %vm423_vm2 = vcmp.lt.s32.totalorder %v109_v19, %v115_v21  ;;  %p287_p12 = scmp.lt.s32.totalorder %s285_s21, %s281_s20 }
  0x25   :  { %v112_v20 = vstv %s238_s15  ;;  %v121_v41 = vld [vmem:[#allocation2] sm:$0x1]  ;;  %v131_v44 = vld [vmem:[#allocation3] sm:$0x1]  ;;  %v242_v54 = vsel %vm423_vm2, 1.0, %v358_v3 }
  0x26   :  { %vm113_vm1 = vcmp.lt.s32.totalorder %v102_v18, %v112_v20  ;;  %vm114_vm3 = vcmp.lt.s32.totalorder %v103_v22, %v112_v20  ;;  %s150_s16 = smul.f32 0.9, %s431_s3  ;;  %p288_p13 = por %p287_p12, %p286_p11 }
  0x27   :  { %vm117_vm4 = vmand %vm113_vm1, %vm423_vm2 }
  0x28   :  { %vm118_vm5 = vmand %vm114_vm3, %vm423_vm2  ;;  %v152_v49 = vstv %s150_s16  ;;  %p289_p0 = pnand %p288_p13, %p282_p10 }
  0x9e   :  { %v81_v5 = vpop.permute.xlu0 %80 }
  0x9f   :  { %v88_v6 = vsub.f32 %v241_v4, %v81_v5 }
  0xa1   :  { %v90_v7 = vsub.f32 1.0, %v88_v6 }
  0xa2   :  { %v86_v8 = vpop.permute.xlu0 %85 }
  0xa3   :  { %v92_v9 = vmax.f32 %v90_v7, 0.0  ;;  %v89_v10 = vsub.f32 %v241_v4, %v86_v8 }
  0xa5   :  { %v94_v11 = vmul.f32 %v92_v9, %v92_v9  ;;  %v91_v12 = vsub.f32 1.0, %v89_v10 }
  0xa7   :  { %v96_v13 = vmul.f32 1.442695, %v94_v11  ;;  %v93_v14 = vmax.f32 %v91_v12, 0.0 }
  0xa9   :  { %251 = vpow2.f32 %v96_v13  ;;  %v95_v16 = vmul.f32 %v93_v14, %v93_v14 }
  0xab   :  { %v98_v17 = vmul.f32 1.442695, %v95_v16 }
  0xad   :  { %253 = vpow2.f32 %v98_v17 }
  0xb3   :  { %v252_v24 = vpop.eup %251 }
  0xb4   :  { %v119_v25 = vsel %vm117_vm4, %v252_v24, 0.0 }
  0xb5   :  { %v132_v28 = vmul.f32 %v119_v25, %v94_v11 }
  0xb7   :  { %v254_v26 = vpop.eup %253 }
  0xb8   :  { %v120_v27 = vsel %vm118_vm5, %v254_v26, 0.0 }
  0xb9   :  { %v122_v29 = vadd.f32 %v120_v27, %v119_v25  ;;  %v133_v30 = vmul.f32 %v120_v27, %v95_v16 }
  0xbb   :  { %v123_v31 = vrot.slane %v122_v29, 4  ;;  %v134_v32 = vadd.f32 %v133_v30, %v132_v28 }
  0xbd   :  { %v124_v33 = vadd.f32 %v123_v31, %v122_v29  ;;  %v135_v34 = vrot.slane %v134_v32, 4 }
  0xbf   :  { %v125_v35 = vrot.slane %v124_v33, 2  ;;  %v136_v36 = vadd.f32 %v135_v34, %v134_v32 }
  0xc1   :  { %v126_v37 = vadd.f32 %v125_v35, %v124_v33  ;;  %v137_v38 = vrot.slane %v136_v36, 2 }
  0xc3   :  { %v127_v39 = vrot.slane %v126_v37, 1  ;;  %v138_v40 = vadd.f32 %v137_v38, %v136_v36 }
  0xc5   :  { %v128_v42 = vadd.f32 %v127_v39, %v126_v37  ;;  %v139_v43 = vrot.slane %v138_v40, 1 }
  0xc7   :  { %v140_v45 = vadd.f32 %v139_v43, %v138_v40  ;;  %v129_v46 = vadd.f32 %v128_v42, %v121_v41 }
  0xc9   :  { %130 = vst [vmem:[#allocation2] sm:$0x1] %v129_v46  ;;  %v141_v47 = vadd.f32 %v140_v45, %v131_v44 }
  0xcb   :  { %142 = vst [vmem:[#allocation3] sm:$0x1] %v141_v47 }
  0xd0   :  { %v151_v51 = vld [vmem:[#allocation2] sm:$0x1] }
  0xd1   :  { %v153_v52 = vmul.f32 %v152_v49, %v151_v51 }
  0xd2   :  { %v169_v56 = vld [vmem:[#allocation3] sm:$0x1] }
  0xd3   :  { %v154_v53 = vadd.f32 %v153_v52, %v149_v50 }
  0xd5   :  { %v156_v55 = vsel %vm423_vm2, %v154_v53, 1.0  ;;  %155 = vst [vmem:[#allocation12] sm:$0x1] %v154_v53 }
  0xd6   :  { %v159_v57 = vmul.f32 %v156_v55, %v156_v55  ;;  %v170_v58 = vmul.f32 %v169_v56, %v156_v55 }
  0xd8   :  { %v160_v59 = vmul.f32 %v242_v54, %v159_v57  ;;  %v171_v61 = vmul.f32 %v242_v54, %v170_v58 }
  0xda   :  { %v162_v60 = vsel %vm161_vm6, %v160_v59, 0.0  ;;  %v172_v62 = vsel %vm161_vm6, %v171_v61, 0.0 }
  0xdb   :  { %163 = vadd.xlane.f32.xlu1 %v162_v60 }
  0xdf   :  { %173 = vadd.xlane.f32.xlu1 %v172_v62 }
  0xe0   :  { %292 = shalt.err (!%p289_p0)
}
  0xe1   :  { %s293_s24 = scalar_lea.hbm %s493_s6, 16 }
  0xe2   :  { %p294_p1 = scmp.ne.s32.totalorder %s493_s6, %s293_s24  ;;  %p297_p2 = scmp.lt.u32.totalorder %s293_s24, %s493_s6 }
  0xe4   :  { %p299_p3 = pnand %p297_p2, %p294_p1 }
  0xe6   :  { %302 = shalt.err (!%p299_p3)
}
  0xe7   :  { %214 = dma.vmem_to_hbm [thread:$0]  %s212_s19, 16, %s493_s6, [#allocation13]   ;;  %v158_v63 = vld [vmem:[#allocation4] sm:$0x1]  ;;  %v168_v2 = vld [vmem:[#allocation5] sm:$0x1] }
  0xe8   :  { %s454_s8 = sld [smem:[#allocation9 + $0x1]]  ;;  %s52_s9 = sld [smem:[#allocation9]] }
  0xe9   :  { %s360_s6 = smov [#allocation14]  }
  0xea   :  { %s221_s10 = sshll.u32 %s360_s6, 4  ;;  %s222_s10 = int_to_ptr.vmem [resolvable:$true] %s221_s10 }
  0xeb   :  { %s303_s11 = scalar_lea.vmem %s222_s10, 16  ;;  %s307_s12 = scalar_lea.vmem %s222_s10, 32 }
  0xec   :  { %p304_p4 = scmp.ne.s32.totalorder %s222_s10, %s303_s11  ;;  %p308_p5 = scmp.lt.s32.totalorder %s222_s10, %s222_s10 }
  0xed   :  { %p309_p6 = scmp.lt.s32.totalorder %s307_s12, %s303_s11 }
  0xee   :  { %s180_s0 = smul.f32 0.9, %s454_s8 }
  0xef   :  { %s179_s1 = smul.f32 0.1, %s52_s9  ;;  %p310_p7 = por %p309_p6, %p308_p5 }
  0xf0   :  { %v182_v5 = vstv %s180_s0 }
  0xf1   :  { %v184_v7 = vstv %s179_s1  ;;  %p311_p8 = pnand %p310_p7, %p304_p4 }
 0x168   :  { %v164_v0 = vpop.xlane.xlu1 %163 }
 0x169   :  { %v165_v1 = vadd.f32 %v164_v0, %v158_v63 }
 0x16b   :  { %167 = vst.msk [vmem:[#allocation4] sm:$0x1] %vm61_vm0, %v165_v1 }
 0x16c   :  { %v174_v3 = vpop.xlane.xlu1 %173 }
 0x16d   :  { %v175_v4 = vadd.f32 %v174_v3, %v168_v2 }
 0x16f   :  { %176 = vst.msk [vmem:[#allocation5] sm:$0x1] %vm61_vm0, %v175_v4 }
 0x172   :  { %v181_v6 = vld [vmem:[#allocation4] sm:$0x1] }
 0x173   :  { %v183_v8 = vmul.f32 %v182_v5, %v181_v6 }
 0x175   :  { %v185_v9 = vadd.f32 %v184_v7, %v183_v8 }
 0x177   :  { %255 = vrcp.f32 %v185_v9  ;;  %187 = vst.msk [vmem:[#allocation14] sm:$0x1] %vm61_vm0, %v185_v9 }
 0x178   :  { %314 = shalt.err (!%p311_p8)
}
 0x179   :  { %s315_s2 = scalar_lea.hbm %s494_s7, 16 }
 0x17a   :  { %p316_p9 = scmp.ne.s32.totalorder %s494_s7, %s315_s2  ;;  %p319_p10 = scmp.lt.u32.totalorder %s315_s2, %s494_s7 }
 0x17c   :  { %p321_p11 = pnand %p319_p10, %p316_p9 }
 0x17e   :  { %324 = shalt.err (!%p321_p11)
}
 0x17f   :  { %224 = dma.vmem_to_hbm [thread:$0]  %s222_s10, 16, %s494_s7, [#allocation13]   ;;  %v188_v10 = vld [vmem:[#allocation5] sm:$0x1] }
 0x180   :  { %s189_s20 = smul.f32 %s431_s3, %s454_s8  ;;  %s361_s21 = smov [#allocation11]  }
 0x181   :  { %s201_s22 = sshll.u32 %s361_s21, 4  ;;  %v256_v13 = vpop.eup %255  ;;  %s202_s22 = int_to_ptr.vmem [resolvable:$true] %s201_s22 }
 0x182   :  { %v190_v11 = vstv %s189_s20  ;;  %s325_s23 = scalar_lea.vmem %s202_s22, 16  ;;  %s329_s24 = scalar_lea.vmem %s202_s22, 32 }
 0x183   :  { %v191_v12 = vmul.f32 %v190_v11, %v188_v10  ;;  %p326_p12 = scmp.ne.s32.totalorder %s202_s22, %s325_s23  ;;  %p330_p13 = scmp.lt.s32.totalorder %s202_s22, %s202_s22 }
 0x184   :  { %p331_p0 = scmp.lt.s32.totalorder %s329_s24, %s325_s23 }
 0x185   :  { %v193_v14 = vmul.f32 %v256_v13, %v191_v12 }
 0x186   :  { %p332_p1 = por %p331_p0, %p330_p13 }
 0x187   :  { %194 = vst.msk [vmem:[#allocation11] sm:$0x1] %vm61_vm0, %v193_v14 }
 0x188   :  { %p333_p2 = pnand %p332_p1, %p326_p12 }
 0x18a   :  { %336 = shalt.err (!%p333_p2)
}
 0x18b   :  { %s337_s25 = scalar_lea.hbm %s492_s5, 16 }
 0x18c   :  { %p338_p3 = scmp.ne.s32.totalorder %s492_s5, %s337_s25  ;;  %p341_p4 = scmp.lt.u32.totalorder %s337_s25, %s492_s5 }
 0x18e   :  { %p343_p5 = pnand %p341_p4, %p338_p3 }
 0x190   :  { %346 = shalt.err (!%p343_p5)
}
 0x191   :  { %204 = dma.vmem_to_hbm [thread:$0]  %s202_s22, 16, %s492_s5, [#allocation7]  }
 0x192   :  { %351 = dma.done.wait [#allocation7], 16  }
 0x193   :  { %352 = vsyncadd [#allocation7], 4294967280 }
 0x194   :  { %353 = dma.done.wait [#allocation13], 32  }
 0x195   :  { %354 = vsyncadd [#allocation13], 4294967264 }
 0x196   :  { %234 = vsyncpa [#allocation7], 1 }
 0x197   :  { %235 = vsyncpa [#allocation13], 1 }
 0x198   :  { %236 = vsyncpa [#allocation8], 1 }
 0x199   :  { %237 = vsyncpa [#allocation10], 1 }

</bundles_post_ra>
